<compile_context>
chip_gen: v7x
topology: tpu7x:2x2x1
jax: 0.10.0
libtpu: 0.0.40
codegen_flags: <defaults>
</compile_context>

<pallas_src>
import functools

import jax
import jax.numpy as jnp
from jax import lax
from jax.experimental import pallas as pl
from jax.experimental.pallas import tpu as pltpu

LANE = 128
SUBLANE = 8
_F32_EPS = float(jnp.finfo(jnp.float32).eps)


def _cdiv(a: int, b: int) -> int:
    return -(-a // b)


def _round_up(x: int, m: int) -> int:
    return _cdiv(x, m) * m


@functools.lru_cache(maxsize=1)
def _max_tile_rows() -> int:
    """Block-row budget per TPU generation (4 f32 streams, double-buffered)."""
    try:
        kind = jax.devices()[0].device_kind.lower()
    except Exception:
        return 2048
    # v6e / v7x: 4096 rows -> 16 MiB resident, fits the 32 MiB default scoped
    # VMEM.  v5e (16 MiB default) and unknown chips stay at 2048 rows (8 MiB).
    if ("v6" in kind) or ("v7" in kind) or ("trillium" in kind):
        return 4096
    return 2048


# ---------------------------------------------------------------------------
# In-kernel helpers
# ---------------------------------------------------------------------------
def _tail_valid(tile_r: int, valid_rows: int):
    """(tile_r, 128) bool: global row index < valid_rows (masks OOB tail)."""
    row = lax.broadcasted_iota(jnp.int32, (tile_r, LANE), 0)
    return (row + pl.program_id(0) * tile_r) < valid_rows


def _partial_sum(x):
    """(r, 128) -> (8, 128) partial sum; two-stage to break the add chain."""
    r = x.shape[0]
    if r >= 64 and r % 64 == 0:
        return x.reshape(r // 64, SUBLANE, SUBLANE, x.shape[-1]).sum(axis=0).sum(axis=0)
    return x.reshape(r // SUBLANE, SUBLANE, x.shape[-1]).sum(axis=0)


def _partial_max(x):
    """(r, 128) -> (8, 128) partial max; two-stage to break the max chain."""
    r = x.shape[0]
    if r >= 64 and r % 64 == 0:
        return x.reshape(r // 64, SUBLANE, SUBLANE, x.shape[-1]).max(axis=0).max(axis=0)
    return x.reshape(r // SUBLANE, SUBLANE, x.shape[-1]).max(axis=0)


# ---------------------------------------------------------------------------
# Kernel A (berhu only): per-block partial max of |pred - target|
# ---------------------------------------------------------------------------
def _make_max_abs_kernel(tile_r: int, valid_rows: int):
    need_tail = (valid_rows % tile_r) != 0

    def kernel(p_ref, t_ref, pmax_ref):
        d = jnp.abs(p_ref[...].astype(jnp.float32) - t_ref[...].astype(jnp.float32))
        if need_tail:
            # OOB rows of the ragged last block are undefined -> force to 0
            # (neutral for max of a non-negative quantity).
            d = jnp.where(_tail_valid(tile_r, valid_rows), d, 0.0)
        pmax_ref[0] = _partial_max(d)

    return kernel


# ---------------------------------------------------------------------------
# Kernel B: elementwise criterion, (optional) masked error map, partial sums
# ---------------------------------------------------------------------------
def _make_loss_kernel(loss_name: str, has_mask: bool, write_err: bool,
                      tile_r: int, valid_rows: int):
    use_delta = loss_name == "berhu"
    need_tail = (valid_rows % tile_r) != 0

    def kernel(*refs):
        idx = 0
        if use_delta:
            dparams_ref = refs[idx]; idx += 1          # SMEM: [delta, delta^2, inv]
        p_ref = refs[idx]; idx += 1
        t_ref = refs[idx]; idx += 1
        if has_mask:
            m_ref = refs[idx]; idx += 1
        if write_err:
            err_ref = refs[idx]; idx += 1
        esum_ref = refs[idx]; idx += 1
        if has_mask:
            msum_ref = refs[idx]; idx += 1

        p = p_ref[...].astype(jnp.float32)
        t = t_ref[...].astype(jnp.float32)
        diff = jnp.abs(p - t)

        if loss_name == "l1":
            per = diff
        elif loss_name == "log_l1":
            per = jnp.log(1.0 + diff)
        else:  # berhu: scalars hoisted to the wrapper, divide -> multiply
            delta = dparams_ref[0]
            delta_sq = dparams_ref[1]
            inv_denom = dparams_ref[2]
            per = jnp.where(diff <= delta, diff, (diff * diff + delta_sq) * inv_denom)

        if has_mask:
            m = m_ref[...].astype(jnp.float32)
            err = m * per
        else:
            m = None
            err = per

        if write_err:
            # OOB-row writes of the ragged last block are discarded by Pallas.
            err_ref[...] = err.astype(err_ref.dtype)

        if need_tail:
            valid = _tail_valid(tile_r, valid_rows)
            err = jnp.where(valid, err, 0.0)
            if has_mask:
                m = jnp.where(valid, m, 0.0)

        esum_ref[0] = _partial_sum(err)
        if has_mask:
            msum_ref[0] = _partial_sum(m)

    return kernel


# ---------------------------------------------------------------------------
# Wrapper
# ---------------------------------------------------------------------------
@functools.partial(jax.jit, static_argnames=("loss_name", "return_err_map"))
def regression_loss(pred, target, mask=None, *, loss_name="berhu",
                    return_err_map=True):
    assert loss_name in ("l1", "log_l1", "berhu")
    orig_shape = pred.shape
    total = pred.size
    has_mask = mask is not None
    out_dtype = jnp.result_type(pred.dtype, target.dtype)

    # View as (rows, 128).  Aligned sizes (total % 1024 == 0) -> free reshape,
    # no HBM copy.  Unaligned sizes pay one minimal zero-pad (f(0)=0 for all
    # three losses, so padded elements are neutral for every reduction).
    rows_raw = _cdiv(total, LANE)
    rows = _round_up(rows_raw, SUBLANE)
    pad = rows * LANE - total

    def _prep(x):
        x = x.reshape(-1)
        if pad:
            x = jnp.pad(x, (0, pad))
        return x.reshape(rows, LANE)

    p2 = _prep(pred)
    t2 = _prep(target)
    if has_mask:
        m_in = mask
        if not jnp.issubdtype(m_in.dtype, jnp.floating):
            # bool / int masks: one cheap cast; float masks (f32 / bf16) are
            # streamed in their native width to keep HBM traffic low.
            m_in = m_in.astype(jnp.float32)
        m2 = _prep(m_in)

    # Biggest per-generation tile, but at least 2 grid blocks so the
    # "parallel" grid axis can feed both v7x TensorCores.
    tile_r = max(SUBLANE,
                 min(_max_tile_rows(), _round_up(_cdiv(rows, 2), SUBLANE)))
    grid = (_cdiv(rows, tile_r),)

    tile_spec = pl.BlockSpec((tile_r, LANE), lambda i: (i, 0))
    part_spec = pl.BlockSpec((1, SUBLANE, LANE), lambda i: (i, 0, 0))
    part_shape = jax.ShapeDtypeStruct((grid[0], SUBLANE, LANE), jnp.float32)
    smem_spec = pl.BlockSpec(memory_space=pltpu.MemorySpace.SMEM)
    cparams = pltpu.CompilerParams(dimension_semantics=("parallel",))

    use_delta = loss_name == "berhu"

    # --- pass 1 (berhu only): global max |diff| via per-block partials ------
    if use_delta:
        pmax = pl.pallas_call(
            _make_max_abs_kernel(tile_r, rows),
            grid=grid,
            in_specs=[tile_spec, tile_spec],
            out_specs=part_spec,
            out_shape=part_shape,
            compiler_params=cparams,
        )(p2, t2)
        delta = jnp.float32(0.2) * jnp.max(pmax)
        # Hoist delta^2 and the reciprocal: removes a per-element divide.
        dparams = jnp.stack(
            [delta, delta * delta, 1.0 / (2.0 * delta + _F32_EPS)]
        ).astype(jnp.float32)

    # --- pass 2: err map (optional) + per-block partial sums ----------------
    in_specs, operands = [], []
    if use_delta:
        in_specs.append(smem_spec)
        operands.append(dparams)
    in_specs += [tile_spec, tile_spec]
    operands += [p2, t2]
    if has_mask:
        in_specs.append(tile_spec)
        operands.append(m2)

    out_specs, out_shapes = [], []
    if return_err_map:
        out_specs.append(tile_spec)
        out_shapes.append(jax.ShapeDtypeStruct((rows, LANE), out_dtype))
    out_specs.append(part_spec)        # err-sum partials
    out_shapes.append(part_shape)
    if has_mask:
        out_specs.append(part_spec)    # mask-sum partials
        out_shapes.append(part_shape)

    outs = pl.pallas_call(
        _make_loss_kernel(loss_name, has_mask, return_err_map, tile_r, rows),
        grid=grid,
        in_specs=in_specs,
        out_specs=out_specs,
        out_shape=tuple(out_shapes),
        compiler_params=cparams,
    )(*operands)
    if not isinstance(outs, (tuple, list)):
        outs = (outs,)

    idx = 0
    err = None
    if return_err_map:
        err2 = outs[idx]; idx += 1
        if pad:
            err = err2.reshape(-1)[:total].reshape(orig_shape)
        else:
            err = err2.reshape(orig_shape)   # free: same size, row-major
    err_sum = jnp.sum(outs[idx]); idx += 1
    if has_mask:
        mask_sum = jnp.sum(outs[idx]); idx += 1
        mask_regr = mask
    else:
        mask_sum = jnp.float32(total)
        # TODO(synk): PyTorch returns torch.ones_like(target) here; we return
        # None to avoid materializing a full-size ones tensor in HBM.
        mask_regr = None

    loss = err_sum / mask_sum
    return loss, {"err_regr": err, "mask_regr": mask_regr}


# ---------------------------------------------------------------------------
# Pure-JAX reference (correctness check)
# ---------------------------------------------------------------------------
def _reference(pred, target, mask=None, loss_name="berhu"):
    if mask is None:
        mask = jnp.ones_like(target)
    mask = mask.astype(jnp.float32)
    p = pred.astype(jnp.float32)
    t = target.astype(jnp.float32)
    diff = jnp.abs(p - t)
    if loss_name == "l1":
        per = diff
    elif loss_name == "log_l1":
        per = jnp.log(1.0 + diff)
    else:
        delta = 0.2 * jnp.max(diff)
        per = jnp.where(diff <= delta, diff,
                        (diff ** 2 + delta ** 2) / (2 * delta + _F32_EPS))
    err = mask * per
    return err.sum() / mask.sum(), err


if __name__ == "__main__":
    key = jax.random.PRNGKey(0)
    k1, k2, k3, k4, k5, k6 = jax.random.split(key, 6)

    # NCHW, like the PyTorch module's depth maps (aligned case -> zero-copy).
    pred = jax.random.uniform(k1, (2, 4, 16, 16), dtype=jnp.float32)
    target = jax.random.uniform(k2, (2, 4, 16, 16), dtype=jnp.float32)
    mask = (jax.random.uniform(k3, (2, 4, 16, 16)) > 0.5).astype(jnp.float32)

    # 1) berhu, no mask (dynamic-delta path, mask-free kernel variant)
    loss, aux = regression_loss(pred, target, loss_name="berhu")
    jax.block_until_ready(loss)
    jax.block_until_ready(aux["err_regr"])
    ref_loss, ref_err = _reference(pred, target, loss_name="berhu")
    assert jnp.allclose(loss, ref_loss, rtol=1e-5, atol=1e-6), (loss, ref_loss)
    assert jnp.allclose(aux["err_regr"], ref_err, rtol=1e-5, atol=1e-6)

    # 2) log_l1 with an explicit mask (no max pass, masked kernel variant)
    loss2, aux2 = regression_loss(pred, target, mask, loss_name="log_l1")
    jax.block_until_ready(loss2)
    ref_loss2, ref_err2 = _reference(pred, target, mask, loss_name="log_l1")
    assert jnp.allclose(loss2, ref_loss2, rtol=1e-5, atol=1e-6), (loss2, ref_loss2)
    assert jnp.allclose(aux2["err_regr"], ref_err2, rtol=1e-5, atol=1e-6)

    # 3) berhu with mask at an unaligned size -> exercises the minimal-pad
    #    path and the in-kernel ragged-tail masking of max / sums.
    pred3 = jax.random.uniform(k4, (2, 4, 16, 18), dtype=jnp.float32)
    target3 = jax.random.uniform(k5, (2, 4, 16, 18), dtype=jnp.float32)
    mask3 = (jax.random.uniform(k6, (2, 4, 16, 18)) > 0.5).astype(jnp.float32)
    loss3, aux3 = regression_loss(pred3, target3, mask3, loss_name="berhu")
    jax.block_until_ready(loss3)
    ref_loss3, ref_err3 = _reference(pred3, target3, mask3, loss_name="berhu")
    assert jnp.allclose(loss3, ref_loss3, rtol=1e-5, atol=1e-6), (loss3, ref_loss3)
    assert jnp.allclose(aux3["err_regr"], ref_err3, rtol=1e-5, atol=1e-6)

    print("KERNEL_OK")
</pallas_src>

<mosaic_0001>
module attributes {stable_mosaic.version = 11 : i64} {
  func.func @kernel(%arg0: i32, %arg1: memref<8x128xf32, #tpu.memory_space<vmem>>, %arg2: memref<8x128xf32, #tpu.memory_space<vmem>>, %arg3: memref<1x8x128xf32, #tpu.memory_space<vmem>>) attributes {dimension_semantics = [#tpu.dimension_semantics<parallel>], iteration_bounds = array<i64: 2>, scalar_prefetch = 0 : i64, scratch_operands = 0 : i64, tpu.core_type = #tpu.core_type<tc>, window_params = [{transform_indices = @transform_0, window_bounds = array<i64: 8, 128>}, {transform_indices = @transform_1, window_bounds = array<i64: 8, 128>}, {transform_indices = @transform_2, window_bounds = array<i64: 1, 8, 128>}]} {
    %c0 = arith.constant 0 : index
    %c0_0 = arith.constant 0 : index
    %0 = vector.load %arg1[%c0, %c0_0] : memref<8x128xf32, #tpu.memory_space<vmem>>, vector<8x128xf32>
    %c0_1 = arith.constant 0 : index
    %c0_2 = arith.constant 0 : index
    %1 = vector.load %arg2[%c0_1, %c0_2] : memref<8x128xf32, #tpu.memory_space<vmem>>, vector<8x128xf32>
    %2 = arith.subf %0, %1 : vector<8x128xf32>
    %3 = math.absf %2 : vector<8x128xf32>
    %4 = vector.shape_cast %3 : vector<8x128xf32> to vector<1x8x128xf32>
    %cst = arith.constant dense<0xFF800000> : vector<8x128xf32>
    %5 = vector.multi_reduction <maximumf>, %4, %cst [0] : vector<1x8x128xf32> to vector<8x128xf32>
    %c0_3 = arith.constant 0 : index
    %c0_4 = arith.constant 0 : index
    %c0_5 = arith.constant 0 : index
    %6 = vector.load %arg3[%c0_3, %c0_4, %c0_5] : memref<1x8x128xf32, #tpu.memory_space<vmem>>, vector<1x8x128xf32>
    %7 = vector.shape_cast %6 : vector<1x8x128xf32> to vector<8x128xf32>
    %8 = vector.shape_cast %5 : vector<8x128xf32> to vector<1x8x128xf32>
    tpu.vector_store %arg3[%c0_3, %c0_4, %c0_5], %8 {strides = array<i32>} : memref<1x8x128xf32, #tpu.memory_space<vmem>>, vector<1x8x128xf32>,
    return
  }
  func.func @transform_0(%arg0: i32) -> (i32, i32) {
    %c0_i32 = arith.constant 0 : i32
    %c0_i32_0 = arith.constant 0 : i32
    return %arg0, %c0_i32 : i32, i32
  }
  func.func @transform_1(%arg0: i32) -> (i32, i32) {
    %c0_i32 = arith.constant 0 : i32
    %c0_i32_0 = arith.constant 0 : i32
    return %arg0, %c0_i32 : i32, i32
  }
  func.func @transform_2(%arg0: i32) -> (i32, i32, i32) {
    %c0_i32 = arith.constant 0 : i32
    %c0_i32_0 = arith.constant 0 : i32
    %c0_i32_1 = arith.constant 0 : i32
    return %arg0, %c0_i32, %c0_i32_0 : i32, i32, i32
  }
}

module attributes {stable_mosaic.version = 11 : i64} {
  func.func @kernel(%arg0: i32, %arg1: memref<3xf32, #tpu.memory_space<smem>>, %arg2: memref<8x128xf32, #tpu.memory_space<vmem>>, %arg3: memref<8x128xf32, #tpu.memory_space<vmem>>, %arg4: memref<8x128xf32, #tpu.memory_space<vmem>>, %arg5: memref<1x8x128xf32, #tpu.memory_space<vmem>>) attributes {dimension_semantics = [#tpu.dimension_semantics<parallel>], iteration_bounds = array<i64: 2>, scalar_prefetch = 0 : i64, scratch_operands = 0 : i64, tpu.core_type = #tpu.core_type<tc>, window_params = [{transform_indices = @transform_0, window_bounds = array<i64: 3>}, {transform_indices = @transform_1, window_bounds = array<i64: 8, 128>}, {transform_indices = @transform_2, window_bounds = array<i64: 8, 128>}, {transform_indices = @transform_3, window_bounds = array<i64: 8, 128>}, {transform_indices = @transform_4, window_bounds = array<i64: 1, 8, 128>}]} {
    %c0 = arith.constant 0 : index
    %c0_0 = arith.constant 0 : index
    %0 = vector.load %arg2[%c0, %c0_0] : memref<8x128xf32, #tpu.memory_space<vmem>>, vector<8x128xf32>
    %c0_1 = arith.constant 0 : index
    %c0_2 = arith.constant 0 : index
    %1 = vector.load %arg3[%c0_1, %c0_2] : memref<8x128xf32, #tpu.memory_space<vmem>>, vector<8x128xf32>
    %2 = arith.subf %0, %1 : vector<8x128xf32>
    %3 = math.absf %2 : vector<8x128xf32>
    %c0_3 = arith.constant 0 : index
    %4 = memref.load %arg1[%c0_3] : memref<3xf32, #tpu.memory_space<smem>>
    %c1 = arith.constant 1 : index
    %5 = memref.load %arg1[%c1] : memref<3xf32, #tpu.memory_space<smem>>
    %c2 = arith.constant 2 : index
    %6 = memref.load %arg1[%c2] : memref<3xf32, #tpu.memory_space<smem>>
    %7 = vector.broadcast %4 : f32 to vector<8x128xf32>
    %8 = arith.cmpf ole, %3, %7 : vector<8x128xf32>
    %9 = arith.mulf %3, %3 : vector<8x128xf32>
    %10 = vector.broadcast %5 : f32 to vector<8x128xf32>
    %11 = arith.addf %9, %10 : vector<8x128xf32>
    %12 = vector.broadcast %6 : f32 to vector<8x128xf32>
    %13 = arith.mulf %11, %12 : vector<8x128xf32>
    %14 = arith.select %8, %3, %13 : vector<8x128xi1>, vector<8x128xf32>
    %c0_4 = arith.constant 0 : index
    %c0_5 = arith.constant 0 : index
    %15 = vector.load %arg4[%c0_4, %c0_5] : memref<8x128xf32, #tpu.memory_space<vmem>>, vector<8x128xf32>
    tpu.vector_store %arg4[%c0_4, %c0_5], %14 {strides = array<i32>} : memref<8x128xf32, #tpu.memory_space<vmem>>, vector<8x128xf32>,
    %16 = vector.shape_cast %14 : vector<8x128xf32> to vector<1x8x128xf32>
    %cst = arith.constant dense<0.000000e+00> : vector<8x128xf32>
    %17 = vector.multi_reduction <add>, %16, %cst [0] : vector<1x8x128xf32> to vector<8x128xf32>
    %c0_6 = arith.constant 0 : index
    %c0_7 = arith.constant 0 : index
    %c0_8 = arith.constant 0 : index
    %18 = vector.load %arg5[%c0_6, %c0_7, %c0_8] : memref<1x8x128xf32, #tpu.memory_space<vmem>>, vector<1x8x128xf32>
    %19 = vector.shape_cast %18 : vector<1x8x128xf32> to vector<8x128xf32>
    %20 = vector.shape_cast %17 : vector<8x128xf32> to vector<1x8x128xf32>
    tpu.vector_store %arg5[%c0_6, %c0_7, %c0_8], %20 {strides = array<i32>} : memref<1x8x128xf32, #tpu.memory_space<vmem>>, vector<1x8x128xf32>,
    return
  }
  func.func @transform_0(%arg0: i32) -> i32 {
    %c0_i32 = arith.constant 0 : i32
    %c0_i32_0 = arith.constant 0 : i32
    return %c0_i32 : i32
  }
  func.func @transform_1(%arg0: i32) -> (i32, i32) {
    %c0_i32 = arith.constant 0 : i32
    %c0_i32_0 = arith.constant 0 : i32
    return %arg0, %c0_i32 : i32, i32
  }
  func.func @transform_2(%arg0: i32) -> (i32, i32) {
    %c0_i32 = arith.constant 0 : i32
    %c0_i32_0 = arith.constant 0 : i32
    return %arg0, %c0_i32 : i32, i32
  }
  func.func @transform_3(%arg0: i32) -> (i32, i32) {
    %c0_i32 = arith.constant 0 : i32
    %c0_i32_0 = arith.constant 0 : i32
    return %arg0, %c0_i32 : i32, i32
  }
  func.func @transform_4(%arg0: i32) -> (i32, i32, i32) {
    %c0_i32 = arith.constant 0 : i32
    %c0_i32_0 = arith.constant 0 : i32
    %c0_i32_1 = arith.constant 0 : i32
    return %arg0, %c0_i32, %c0_i32_0 : i32, i32, i32
  }
}

</mosaic_0001>

<bundles_post_ra>
// kernel: regression_loss.3
= control target key start
LH: loop header
LB: loop body
LE: loop exit
PB: predicated region body
PF: predicated region fallthrough
CT: control target
= control target key end

     0   :  { %10 = vsyncpa [#allocation3], 0  ;;  %s448_s15 = smov 0   ;;  %s485_s0 = inlined_call_operand.vmem [shape: f32[3], index: 0, kind: input, shape index: {}]   ;;  %s486_s1 = inlined_call_operand.vmem [shape: f32[16,128], index: 1, kind: input, shape index: {}]   ;;  %s487_s2 = inlined_call_operand.vmem [shape: f32[16,128], index: 2, kind: input, shape index: {}]   ;;  %s488_s3 = inlined_call_operand.vmem [shape: f32[16,128], index: 3, kind: output, shape index: {0}]   ;;  %s489_s4 = inlined_call_operand.vmem [shape: f32[2,8,128], index: 4, kind: output, shape index: {1}]  }
   0x1 LB: > { %s361_s16 = sadd.s32 4294967295, %s420_s15   ;;  %p363_p0 = scmp.ge.s32.totalorder %s420_s15, 1  ;;  %s420_s15 = sphi %s448_s15, %s16_s15  }
   0x2   : > { %p146_p1 = scmp.lt.s32.totalorder %s420_s15, 3  ;;  %s159_s19 = sshll.u32 %s485_s0, 4  ;;  %s160_s19 = int_to_ptr.vmem [resolvable:$true] %s159_s19 }
   0x3   : > { %p384_p3 = scmp.eq.s32.totalorder %s361_s16, 0  ;;  %s395_s21 = scalar_lea.vmem %s160_s19, 16 }
   0x4   : > { %p459_p2 = pnand %p363_p0, %p146_p1  ;;  %p396_p6 = scmp.ne.s32.totalorder %s160_s19, %s395_s21 }
   0x5   : > { %p403_p10 = scmp.lt.s32.totalorder %s160_s19, %s160_s19  ;;  %p404_p11 = scmp.lt.s32.totalorder %s395_s21, %s395_s21 }
   0x6   : > { %p380_p4 = pneg %p459_p2 }
   0x7   : > { %p405_p12 = por %p404_p11, %p403_p10 }
   0x8   : > { %p381_p5 = pnand %p384_p3, %p380_p4 }
   0xa   : > { %p397_p7 = pneg %p381_p5 }
   0xc   : > { %p398_p8 = pnand %p397_p7, %p396_p6 }
   0xe   : > { %p399_p9 = pneg %p398_p8 }
  0x10   : > { %p406_p13 = pnand %p405_p12, %p399_p9 }
  0x12   : > { %409 = shalt.err (!%p406_p13)
}
  0x13   : > { %s422_s22 = smov [#allocation2]   ;;  %186 = sbr.rel (%p459_p2) target bundleno = 48 (0x30), region = 32 }
  0x14   : > { %383 = dma.vmem_to_smem (!%p381_p5), %s160_s19, 16, %s422_s22, [#allocation3]  }
  0x1a   : > { %415 = dma.done.wait (%p384_p3), [#allocation3], 16  }
  0x1b   : > { %417 = vsyncadd (%p384_p3), [#allocation3], 4294967280 }
  0x1c   : > { %192 = sfence }
  0x1d   : > { %p219_p0 = scmp.lt.s32.totalorder %s361_s16, 1  ;;  %s372_s23 = sld [smem:[#allocation2 + $0x1]] }
  0x1e   : > { %s239_s24 = sld [smem:[#allocation2]]  ;;  %s373_s26 = sld [smem:[#allocation2 + $0x2]] }
  0x1f   : > { %s492_s16 = smov (!%p219_p0, %s361_s16), 1 }
  0x20   : > { %s368_s25 = sshll.u32 %s492_s16, 3 }
  0x21   : > { %s222_s29 = scalar_lea.vmem %s486_s1, %s368_s25  ;;  %s226_s6 = scalar_lea.vmem %s487_s2, %s368_s25 }
  0x22   : > { %v235_v0 = vld [vmem:[%s222_s29] sm:$0xff]  ;;  %s230_s9 = scalar_lea.vmem %s488_s3, %s368_s25  ;;  %s234_s12 = scalar_lea.vmem %s489_s4, %s368_s25 }
  0x23   : > { %v236_v1 = vld [vmem:[%s226_s6] sm:$0xff]  ;;  %v245_v4 = vstv %s372_s23 }
  0x24   : > { %v237_v2 = vsub.f32 %v235_v0, %v236_v1  ;;  %v242_v5 = vstv %s239_s24  ;;  %v247_v7 = vstv %s373_s26 }
  0x26   : > { %v238_v3 = vand.u32 2147483647, %v237_v2 }
  0x28   : > { %v244_v6 = vmul.f32 %v238_v3, %v238_v3  ;;  %vm243_vm0 = vcmp.le.f32.partialorder %v238_v3, %v242_v5 }
  0x2a   : > { %v246_v8 = vadd.f32 %v245_v4, %v244_v6 }
  0x2c   : > { %v248_v9 = vmul.f32 %v247_v7, %v246_v8 }
  0x2e   : > { %v249_v10 = vsel %vm243_vm0, %v238_v3, %v248_v9 }
  0x2f   : > { %250 = vst [vmem:[%s230_s9] sm:$0xff] %v249_v10  ;;  %252 = vst [vmem:[%s234_s12] sm:$0xff] %v249_v10 }
  0x30 PF: > { %s16_s15 = sadd.s32 1, %s420_s15  }
  0x31   : > { %p13_p1 = scmp.ge.s32.totalorder %s16_s15, 4  }
  0x33   :  { %15 = sbr.rel (!%p13_p1) target bundleno = 1 (0x1), region = 82 }
  0x3a   :  { %286 = vsyncpa [#allocation3], 1 }
  0x3b   :  { %288 = vsyncpa [#allocation3 + $0x1], 1 }

// kernel: regression_loss.2
= control target key start
LH: loop header
LB: loop body
LE: loop exit
PB: predicated region body
PF: predicated region fallthrough
CT: control target
= control target key end

     0   :  { %s248_s9 = smov 0   ;;  %s276_s0 = inlined_call_operand.vmem [shape: f32[16,128], index: 0, kind: input, shape index: {}]   ;;  %s277_s1 = inlined_call_operand.vmem [shape: f32[16,128], index: 1, kind: input, shape index: {}]   ;;  %s278_s2 = inlined_call_operand.vmem [shape: f32[2,8,128], index: 2, kind: output, shape index: {}]  }
   0x1 LB: > { %s226_s10 = sadd.s32 4294967295, %s250_s9   ;;  %p230_p0 = scmp.ge.s32.totalorder %s250_s9, 1  ;;  %s250_s9 = sphi %s248_s9, %s12_s9  }
   0x2   : > { %p120_p1 = scmp.lt.s32.totalorder %s250_s9, 3 }
   0x4   : > { %p121_p2 = pnand %p230_p0, %p120_p1 }
   0x5   : > { %p144_p3 = scmp.lt.s32.totalorder (!%p121_p2), %s226_s10, 1 }
   0x6   : > { %124 = sbr.rel (%p121_p2) target bundleno = 23 (0x17), region = 28 }
   0xd   : > { %s280_s10 = smov (!%p144_p3, %s226_s10), 1 }
   0xe   : > { %s231_s11 = sshll.u32 %s280_s10, 3 }
   0xf   : > { %s147_s14 = scalar_lea.vmem %s276_s0, %s231_s11  ;;  %s151_s17 = scalar_lea.vmem %s277_s1, %s231_s11 }
  0x10   : > { %v156_v0 = vld [vmem:[%s147_s14] sm:$0xff]  ;;  %s155_s20 = scalar_lea.vmem %s278_s2, %s231_s11 }
  0x11   : > { %v157_v1 = vld [vmem:[%s151_s17] sm:$0xff] }
  0x12   : > { %v158_v2 = vsub.f32 %v156_v0, %v157_v1 }
  0x14   : > { %v159_v3 = vand.u32 2147483647, %v158_v2 }
  0x16   : > { %160 = vst [vmem:[%s155_s20] sm:$0xff] %v159_v3 }
  0x17 PF: > { %s12_s9 = sadd.s32 1, %s250_s9  }
  0x18   : > { %p9_p4 = scmp.ge.s32.totalorder %s12_s9, 4  }
  0x1a   :  { %11 = sbr.rel (!%p9_p4) target bundleno = 1 (0x1), region = 61 }

</bundles_post_ra>
